<compile_context>
chip_gen: v6e
topology: v6e:2x2x1
jax: 0.10.0
libtpu: 0.0.40
codegen_flags: <defaults>
</compile_context>

<pallas_src>
import jax
import jax.numpy as jnp
from jax.experimental import pallas as pl
from jax.experimental.pallas import tpu as pltpu

_TILE_BUDGET_BYTES = 8 * 1024 * 1024    # padded bytes of ONE input block; live set ~= 4x this
_VMEM_LIMIT_BYTES = 64 * 1024 * 1024


def _shuffle_kernel(x_ref, o_ref):
    # x_ref: (nb, g, cb, R, L)   o_ref: (nb, cb, g, R, L)
    # Swapping two *leading* (non-tiled) axes is just a tile-order copy in
    # VMEM; each (R, L) tile is moved intact (no XLU relayout).  g is static,
    # so this unrolls into g slice copies.
    g = x_ref.shape[1]
    for gi in range(g):
        o_ref[:, :, gi, :, :] = x_ref[:, gi, :, :, :]


def _spatial_factorization(hw: int, sublane: int):
    """Factor H*W == R*L minimizing the padded (sublane, 128) VMEM footprint.

    Ties prefer a lane-dense L (multiple of 128 -> unmasked vst), then the
    largest L."""
    best_key, best = None, (hw, 1)
    for l in range(1, hw + 1):
        if hw % l:
            continue
        r = hw // l
        padded = (-(-r // sublane) * sublane) * (-(-l // 128) * 128)
        key = (padded, 0 if l % 128 == 0 else 1, -l)
        if best_key is None or key < best_key:
            best_key, best = key, (r, l)
    return best


def channel_shuffle(x: jax.Array, groups: int) -> jax.Array:
    """Pallas TPU implementation of timm ChannelShuffle.forward on NCHW input."""
    N, C, H, W = x.shape
    g = int(groups)
    assert C % g == 0, f"Incompatible group size {g} for input channel {C}"
    cpg = C // g
    HW = H * W
    itemsize = jnp.dtype(x.dtype).itemsize
    sublane = max(8, 32 // itemsize)          # 8 for f32, 16 for bf16, 32 for int8/fp8

    R, L = _spatial_factorization(HW, sublane)
    rp = -(-R // sublane) * sublane
    lp = -(-L // 128) * 128
    padded_chan_bytes = rp * lp * itemsize    # padded VMEM bytes of one channel's (R, L) tile

    # --- tile sizing on PADDED bytes; one input block is (nb, g, cb, R, L) ---
    per_n_bytes = g * cpg * padded_chan_bytes
    if per_n_bytes <= _TILE_BUDGET_BYTES:
        cb = cpg
        nb = min(N, max(1, _TILE_BUDGET_BYTES // per_n_bytes))
    else:
        nb = 1
        cb = min(cpg, max(1, _TILE_BUDGET_BYTES // (g * padded_chan_bytes)))

    # Keep >= 2 grid steps when the problem allows, so the "parallel"
    # dimension semantics can shard work across both TensorCores on v7x.
    if pl.cdiv(N, nb) * pl.cdiv(cpg, cb) < 2:
        if N > 1:
            nb = pl.cdiv(N, 2)
        elif cpg > 1:
            cb = pl.cdiv(cpg, 2)

    grid = (pl.cdiv(N, nb), pl.cdiv(cpg, cb))

    # Free reshapes on contiguous NCHW: channels split into (g, cpg), spatial
    # dims merged / re-factored into a lane-dense (R, L).
    x5 = x.reshape(N, g, cpg, R, L)

    # out5[n, ci, gi, r, l] = x5[n, gi, ci, r, l]
    out5 = pl.pallas_call(
        _shuffle_kernel,
        out_shape=jax.ShapeDtypeStruct((N, cpg, g, R, L), x.dtype),
        grid_spec=pltpu.PrefetchScalarGridSpec(
            num_scalar_prefetch=0,
            grid=grid,
            in_specs=[
                pl.BlockSpec((nb, g, cb, R, L),
                             lambda ni, cj: (ni, 0, cj, 0, 0)),
            ],
            out_specs=pl.BlockSpec((nb, cb, g, R, L),
                                   lambda ni, cj: (ni, cj, 0, 0, 0)),
        ),
        compiler_params=pltpu.CompilerParams(
            dimension_semantics=("parallel", "parallel"),
            vmem_limit_bytes=_VMEM_LIMIT_BYTES,
        ),
        cost_estimate=pl.CostEstimate(
            flops=0,
            transcendentals=0,
            bytes_accessed=2 * x.size * itemsize,
        ),
    )(x5)

    return out5.reshape(N, C, H, W)


def channel_shuffle_ref(x: jax.Array, groups: int) -> jax.Array:
    """Pure-JAX reference matching the PyTorch forward exactly."""
    N, C, H, W = x.shape
    g = groups
    return (
        x.reshape(N, g, C // g, H, W)
        .transpose(0, 2, 1, 3, 4)
        .reshape(N, C, H, W)
    )


if __name__ == "__main__":
    key = jax.random.PRNGKey(0)
    cases = [
        ((2, 4, 16, 16), 2, jnp.float32),   # primary spec-sized case
        ((2, 6, 8, 8), 3, jnp.float32),     # HW not a multiple of 128
        ((1, 8, 16, 16), 4, jnp.bfloat16),  # sub-32-bit dtype (16-row sublane)
        ((3, 8, 7, 7), 2, jnp.float32),     # awkward N -> ragged edge block via cdiv grid
    ]
    for shape, g, dt in cases:
        key, sub = jax.random.split(key)
        x = jax.random.normal(sub, shape, dtype=jnp.float32).astype(dt)
        out = jax.block_until_ready(channel_shuffle(x, g))
        ref = channel_shuffle_ref(x, g)
        assert out.shape == ref.shape and out.dtype == ref.dtype
        assert jnp.array_equal(out, ref), f"mismatch for shape={shape}, groups={g}"
    print("KERNEL_OK")
</pallas_src>

<mosaic_0001>
module attributes {stable_mosaic.version = 11 : i64} {
  func.func @_shuffle_kernel(%arg0: i32, %arg1: i32, %arg2: memref<1x2x2x2x128xf32, #tpu.memory_space<vmem>>, %arg3: memref<1x2x2x2x128xf32, #tpu.memory_space<vmem>>) attributes {dimension_semantics = [#tpu.dimension_semantics<parallel>, #tpu.dimension_semantics<parallel>], iteration_bounds = array<i64: 2, 1>, scalar_prefetch = 0 : i64, scratch_operands = 0 : i64, tpu.core_type = #tpu.core_type<tc>, window_params = [{transform_indices = @transform_0, window_bounds = array<i64: 1, 2, 2, 2, 128>}, {transform_indices = @transform_1, window_bounds = array<i64: 1, 2, 2, 2, 128>}]} {
    %c0 = arith.constant 0 : index
    %c0_0 = arith.constant 0 : index
    %c0_1 = arith.constant 0 : index
    %c0_2 = arith.constant 0 : index
    %c0_3 = arith.constant 0 : index
    %0 = vector.load %arg2[%c0, %c0_0, %c0_1, %c0_2, %c0_3] : memref<1x2x2x2x128xf32, #tpu.memory_space<vmem>>, vector<1x1x2x2x128xf32>
    %1 = vector.shape_cast %0 : vector<1x1x2x2x128xf32> to vector<1x2x2x128xf32>
    %c0_4 = arith.constant 0 : index
    %c0_5 = arith.constant 0 : index
    %c0_6 = arith.constant 0 : index
    %c0_7 = arith.constant 0 : index
    %c0_8 = arith.constant 0 : index
    %2 = vector.load %arg3[%c0_4, %c0_5, %c0_6, %c0_7, %c0_8] : memref<1x2x2x2x128xf32, #tpu.memory_space<vmem>>, vector<1x2x1x2x128xf32>
    %3 = vector.shape_cast %2 : vector<1x2x1x2x128xf32> to vector<1x2x2x128xf32>
    %4 = vector.shape_cast %1 : vector<1x2x2x128xf32> to vector<1x2x1x2x128xf32>
    tpu.vector_store %arg3[%c0_4, %c0_5, %c0_6, %c0_7, %c0_8], %4 {strides = array<i32>} : memref<1x2x2x2x128xf32, #tpu.memory_space<vmem>>, vector<1x2x1x2x128xf32>,
    %c0_9 = arith.constant 0 : index
    %c1 = arith.constant 1 : index
    %c0_10 = arith.constant 0 : index
    %c0_11 = arith.constant 0 : index
    %c0_12 = arith.constant 0 : index
    %5 = vector.load %arg2[%c0_9, %c1, %c0_10, %c0_11, %c0_12] : memref<1x2x2x2x128xf32, #tpu.memory_space<vmem>>, vector<1x1x2x2x128xf32>
    %6 = vector.shape_cast %5 : vector<1x1x2x2x128xf32> to vector<1x2x2x128xf32>
    %c0_13 = arith.constant 0 : index
    %c0_14 = arith.constant 0 : index
    %c1_15 = arith.constant 1 : index
    %c0_16 = arith.constant 0 : index
    %c0_17 = arith.constant 0 : index
    %7 = vector.load %arg3[%c0_13, %c0_14, %c1_15, %c0_16, %c0_17] : memref<1x2x2x2x128xf32, #tpu.memory_space<vmem>>, vector<1x2x1x2x128xf32>
    %8 = vector.shape_cast %7 : vector<1x2x1x2x128xf32> to vector<1x2x2x128xf32>
    %9 = vector.shape_cast %6 : vector<1x2x2x128xf32> to vector<1x2x1x2x128xf32>
    tpu.vector_store %arg3[%c0_13, %c0_14, %c1_15, %c0_16, %c0_17], %9 {strides = array<i32>} : memref<1x2x2x2x128xf32, #tpu.memory_space<vmem>>, vector<1x2x1x2x128xf32>,
    return
  }
  func.func @transform_0(%arg0: i32, %arg1: i32) -> (i32, i32, i32, i32, i32) {
    %c0_i32 = arith.constant 0 : i32
    %c0_i32_0 = arith.constant 0 : i32
    %c0_i32_1 = arith.constant 0 : i32
    %c0_i32_2 = arith.constant 0 : i32
    return %arg0, %c0_i32, %arg1, %c0_i32_0, %c0_i32_1 : i32, i32, i32, i32, i32
  }
  func.func @transform_1(%arg0: i32, %arg1: i32) -> (i32, i32, i32, i32, i32) {
    %c0_i32 = arith.constant 0 : i32
    %c0_i32_0 = arith.constant 0 : i32
    %c0_i32_1 = arith.constant 0 : i32
    %c0_i32_2 = arith.constant 0 : i32
    return %arg0, %arg1, %c0_i32, %c0_i32_0, %c0_i32_1 : i32, i32, i32, i32, i32
  }
}

</mosaic_0001>

<bundles_post_ra>
// kernel: tpu_custom_call.1
= control target key start
LH: loop header
LB: loop body
LE: loop exit
PB: predicated region body
PF: predicated region fallthrough
CT: control target
= control target key end

     0   :  { %6 = vsyncpa [#allocation3], 0  ;;  %s628_s0 = inlined_call_operand.hbm [shape: f32[2,2,2,2,128], index: 0, kind: input, shape index: {}]   ;;  %s629_s1 = inlined_call_operand.hbm [shape: f32[2,2,2,2,128], index: 1, kind: output, shape index: {}]  }
   0x1   :  { %8 = vsyncpa [#allocation3 + $0x1], 0 }
   0x2   :  { %9 = vsyncpa [#allocation4], 0 }
   0x3   :  { %11 = vsyncpa [#allocation4 + $0x1], 0  ;;  %s482_s6 = smov 0   ;;  %s484_s7 = smov 0  }
   0x4   :  { %s486_s8 = smov 0   ;;  %s488_s9 = smov 0  }
   0x5   :  { %s490_s10 = smov 0   ;;  %s492_s11 = smov 0  }
   0x6 LB: > { %s269_s12 = sadd.s32 4294967295, %s464_s11   ;;  %s270_s13 = sadd.s32 4294967294, %s464_s11   ;;  %s464_s11 = sphi %s492_s11, %s17_s11   ;;  %s460_s10 = sphi %s490_s10, %s640_s10   ;;  %s456_s9 = sphi %s488_s9, %s639_s9   ;;  %s452_s8 = sphi %s486_s8, %s638_s8   ;;  %s448_s7 = sphi %s484_s7, %s637_s7   ;;  %s444_s6 = sphi %s482_s6, %s636_s6  }
   0x7   : > { %s29_s14 = sadd.s32 1, %s460_s10  ;;  %s38_s15 = sadd.s32 1, %s452_s8 }
   0x8   : > { %p31_p0 = scmp.ge.s32.totalorder %s29_s14, 2  ;;  %p45_p1 = scmp.ne.s32.totalorder %s452_s8, %s448_s7 }
   0x9   : > { %p46_p2 = scmp.eq.s32.totalorder %s464_s11, 0  ;;  %p51_p3 = scmp.ne.s32.totalorder %s448_s7, %s444_s6 }
   0xa   : > { %s642_s14 = smov (%p31_p0, %s29_s14), 0  ;;  %p52_p5 = scmp.eq.s32.totalorder %s269_s12, 0 }
   0xb   : > { %p523_p4 = por %p46_p2, %p45_p1  ;;  %s33_s17 = ssub.s32 %s460_s10, %s642_s14 }
   0xc   : > { %p77_p6 = scmp.eq.s32.totalorder %s269_s12, 1  ;;  %p36_p7 = scmp.eq.s32.totalorder %s33_s17, 0 }
   0xd   : > { %p529_p8 = por %p52_p5, %p51_p3  ;;  %p83_p10 = scmp.eq.s32.totalorder %s270_s13, 1 }
   0xe   : > { %p533_p9 = por %p77_p6, %p45_p1  ;;  %p302_p13 = scmp.lt.s32.totalorder %s464_s11, 2 }
   0xf   : > { %s538_s20 = scalar_select %p36_p7, %s452_s8, %s38_s15  }
  0x10   : > { %p540_p11 = por %p83_p10, %p51_p3  ;;  %s103_s22 = sand.u32 1, %s452_s8  }
  0x11   : > { %s273_s23 = sshll.u32 %s103_s22, 3  ;;  %s288_s24 = sshll.u32 %s460_s10, 7 }
  0x12   : > { %s115_s27 = scalar_lea.hbm %s628_s0, %s288_s24  ;;  %s107_s28 = scalar_lea.vmem [#allocation2], %s273_s23 }
  0x13   : > { %s116_s29 = sshll.u32 %s107_s28, 4  ;;  %p553_p0 = pnand %p302_p13, %p523_p4  ;;  %s117_s29 = int_to_ptr.vmem [resolvable:$true] %s116_s29 }
  0x14   : > { %p276_p1 = scmp.ge.s32.totalorder %s464_s11, 1  ;;  %s104_s2 = scalar_lea.sflag [#allocation3], %s103_s22 }
  0x15   : > { %p358_p2 = pneg %p553_p0  ;;  %s369_s3 = scalar_lea.vmem %s117_s29, 128 }
  0x16   : > { %p370_p3 = scmp.ne.s32.totalorder %s117_s29, %s369_s3  ;;  %s466_s4 = smov [#allocation2]  }
  0x17   : > { %s374_s5 = sshll.u32 %s466_s4, 4  ;;  %s375_s5 = int_to_ptr.vmem [resolvable:$false] %s374_s5 }
  0x18   : > { %p372_p5 = pnand %p370_p3, %p358_p2  ;;  %s376_s12 = scalar_lea.vmem %s375_s5, 256 }
  0x19   : > { %p377_p7 = scmp.lt.s32.totalorder %s117_s29, %s375_s5  ;;  %p378_p10 = scmp.lt.s32.totalorder %s376_s12, %s369_s3 }
  0x1a   : > { %p373_p6 = pneg %p372_p5 }
  0x1b   : > { %p379_p12 = por %p378_p10, %p377_p7 }
  0x1d   : > { %p380_p4 = pnand %p379_p12, %p373_p6 }
  0x1f   : > { %383 = shalt.err (!%p380_p4)
}
  0x20   : > { %s467_s13 = smov 32   ;;  %s468_s15 = smov 2  }
  0x21   : > { %297 = dma.hbm_to_vmem [thread:$0]  (!%p553_p0), %s115_s27, 128, %s117_s29, %s104_s2, %s467_s13, %s467_s13, %s468_s15  }
  0x22   : > { %p124_p13 = scmp.lt.s32.totalorder %s464_s11, 3 }
  0x24   : > { %p125_p2 = pnand %p276_p1, %p124_p13 }
  0x25   : > { %s566_s16 = sand.u32 (!%p125_p2), 1, %s448_s7  }
  0x26   : > { %128 = sbr.rel (%p125_p2) target bundleno = 70 (0x46), region = 24  ;;  %s277_s17 = sshll.u32 (!%p125_p2), %s566_s16, 3 }
  0x27   : > { %s131_s22 = scalar_lea.sflag (!%p125_p2), [#allocation3], %s566_s16  ;;  %s134_s23 = scalar_lea.vmem (!%p125_p2), [#allocation2], %s277_s17 }
  0x2b   : > { %435 = dma.done.wait (%p529_p8), %s131_s22, 128  }
  0x2c   : > { %437 = vsyncadd (%p529_p8), %s131_s22, 4294967168  ;;  %s152_s24 = scalar_lea.vmem [#allocation5], %s277_s17  ;;  %s289_s26 = sshll.u32 %s456_s9, 7  ;;  %v155_v0 = vld [vmem:[%s134_s23] sm:$0x3] }
  0x2d   : > { %s182_s25 = sshll.u32 %s152_s24, 4  ;;  %v156_v1 = vld [vmem:[%s134_s23 + $0x2] sm:$0x3]  ;;  %v279_v2 = vld [vmem:[%s134_s23 + $0x4] sm:$0x3]  ;;  %s580_s29 = scalar_lea.hbm %s629_s1, %s289_s26  ;;  %157 = vst [vmem:[%s152_s24] sm:$0x3] %v155_v0  ;;  %s575_s25 = int_to_ptr.vmem [resolvable:$true] %s182_s25 }
  0x2e   : > { %158 = vst [vmem:[%s152_s24 + $0x4] sm:$0x3] %v156_v1  ;;  %281 = vst [vmem:[%s152_s24 + $0x2] sm:$0x3] %v279_v2  ;;  %v280_v3 = vld [vmem:[%s134_s23 + $0x6] sm:$0x3] }
  0x2f   : > { %282 = vst [vmem:[%s152_s24 + $0x6] sm:$0x3] %v280_v3  ;;  %s166_s18 = scalar_lea.sflag [#allocation4], %s566_s16  ;;  %s384_s9 = scalar_lea.vmem %s575_s25, 128 }
  0x30   : > { %p385_p8 = scmp.ne.s32.totalorder %s575_s25, %s384_s9  ;;  %s469_s30 = smov [#allocation5]  }
  0x31   : > { %s388_s2 = sshll.u32 %s469_s30, 4  ;;  %s389_s2 = int_to_ptr.vmem [resolvable:$false] %s388_s2 }
  0x32   : > { %p386_p12 = pnand %p385_p8, %p533_p9  ;;  %s390_s3 = scalar_lea.vmem %s389_s2, 256 }
  0x33   : > { %p391_p1 = scmp.lt.s32.totalorder %s575_s25, %s389_s2  ;;  %p392_p3 = scmp.lt.s32.totalorder %s390_s3, %s384_s9 }
  0x34   : > { %p387_p0 = pneg %p386_p12 }
  0x35   : > { %p393_p5 = por %p392_p3, %p391_p1 }
  0x37   : > { %p394_p6 = pnand %p393_p5, %p387_p0 }
  0x39   : > { %397 = shalt.err (!%p394_p6)
}
  0x3a   : > { %s398_s4 = scalar_lea.hbm %s580_s29, 128  ;;  %s402_s13 = scalar_lea.hbm %s629_s1, 256 }
  0x3b   : > { %p399_p7 = scmp.ne.s32.totalorder %s580_s29, %s398_s4  ;;  %p403_p13 = scmp.lt.s32.totalorder %s580_s29, %s629_s1 }
  0x3c   : > { %p404_p2 = scmp.lt.s32.totalorder %s402_s13, %s398_s4 }
  0x3d   : > { %p400_p10 = pnand %p399_p7, %p533_p9 }
  0x3e   : > { %p405_p8 = por %p404_p2, %p403_p13 }
  0x3f   : > { %p401_p4 = pneg %p400_p10 }
  0x41   : > { %p406_p12 = pnand %p405_p8, %p401_p4 }
  0x43   : > { %409 = shalt.err (!%p406_p12)
}
  0x44   : > { %s470_s22 = smov 32   ;;  %s471_s23 = smov 2  }
  0x45   : > { %292 = dma.vmem_to_hbm [thread:$0]  (%p533_p9), %s575_s25, 128, %s580_s29, %s166_s18, %s470_s22, %s470_s22, %s471_s23  }
  0x46 PF: > { %s197_s24 = sand.u32 1, %s444_s6   ;;  %p635_p0 = scmp.ge.s32.totalorder %s464_s11, 2 }
  0x47   : > { %s198_s26 = scalar_lea.sflag [#allocation4], %s197_s24 }
  0x48   : > { %p299_p1 = pnand %p635_p0, %p540_p11 }
  0x4a   : > { %p300_p3 = pneg %p299_p1 }
  0x4c   : > { %439 = dma.done.wait (%p300_p3), %s198_s26, 128  }
  0x4d   : > { %441 = vsyncadd (%p300_p3), %s198_s26, 4294967168  ;;  %s17_s11 = sadd.s32 1, %s464_s11   ;;  %s636_s6 = smov %s448_s7 }
  0x4e   : > { %p14_p5 = scmp.ge.s32.totalorder %s17_s11, 4   ;;  %s637_s7 = smov %s452_s8 }
  0x4f   : > { %s638_s8 = smov %s538_s20  ;;  %s639_s9 = smov %s460_s10 }
  0x50   : > { %s640_s10 = smov %s642_s14  ;;  %16 = sbr.rel (!%p14_p5) target bundleno = 6 (0x6), region = 71 }
  0x55   :  { %203 = vsyncpa [#allocation3], 1 }
  0x56   :  { %205 = vsyncpa [#allocation3 + $0x1], 1 }
  0x57   :  { %206 = vsyncpa [#allocation4], 1 }
  0x58   :  { %208 = vsyncpa [#allocation4 + $0x1], 1 }

</bundles_post_ra>
